<compile_context>
chip_gen: v6e
topology: v6e:2x2x1
jax: 0.10.0
libtpu: 0.0.40
codegen_flags: <defaults>
</compile_context>

<pallas_src>
import jax
import jax.numpy as jnp
from jax.experimental import pallas as pl
from jax.experimental.pallas import tpu as pltpu


def _round_up(x, m):
    return ((x + m - 1) // m) * m


def _onelora_kernel(x_ref, w_ref, b_ref, out_ref):
    # x tile: (tm, Cin) f32 -> bf16 in-kernel (VPU cast, free slot).
    x = x_ref[...].astype(jnp.bfloat16)
    # Single MXU pass against the LoRA-folded weight, f32 accumulation.
    y = jnp.dot(x, w_ref[...], preferred_element_type=jnp.float32)
    out_ref[...] = (y + b_ref[...]).astype(out_ref.dtype)


def prepare_weights(params, task):
    """One-time (per task) host-side weight prep: fold LoRA into the dense weight.

    W_eff = W_U + alpha * (A_task @ B_task), cast to bf16 for the MXU.
    """
    hi = jax.lax.Precision.HIGHEST
    wU = params["wU"].astype(jnp.float32)          # (Cin, Cout)
    A_t = params["loraA"][task].astype(jnp.float32)  # (Cin, rank)
    B_t = params["loraB"][task].astype(jnp.float32)  # (rank, Cout)
    w_eff = wU + params["alpha"] * jnp.dot(A_t, B_t, precision=hi)
    return {
        "w_eff": w_eff.astype(jnp.bfloat16),               # (Cin, Cout) bf16
        "bias": params["bU"].astype(jnp.float32).reshape(1, -1),  # (1, Cout) f32
    }


def channel_projection_onelora(x, fused, *, tm=512):
    """x: (B, H, W, Cin) float32. fused: output of prepare_weights()."""
    B, H, W, Cin = x.shape
    N = B * H * W
    w_eff = fused["w_eff"]
    bias = fused["bias"]
    Cout = w_eff.shape[1]

    # Row tiling: big tiles (multiple of 8), but aim for >= 8 grid steps when N
    # allows so both v7x TensorCores get several steps each (pipelining).
    tm = max(8, (tm // 8) * 8)
    tm = min(tm, max(8, _round_up(pl.cdiv(N, 8), 8)))
    grid = (pl.cdiv(N, tm),)

    x2 = x.reshape(N, Cin)  # no cast, no pad — ragged last block handled by Pallas

    # VMEM budget: double-buffered x/out tiles + resident weight/bias, with
    # headroom; cap at ~80% of physical VMEM (64 MiB on v7x, 128 MiB v5e/v6e).
    try:
        cap = int(getattr(pltpu.get_tpu_info(), "vmem_capacity_bytes", 64 << 20))
    except Exception:
        cap = 64 << 20
    est = 2 * (tm * Cin * 4 + tm * Cout * 4) + 2 * (w_eff.size * 2 + bias.size * 4)
    vmem_limit = int(min(int(cap * 0.8), max(3 * est, 16 << 20)))

    out = pl.pallas_call(
        _onelora_kernel,
        out_shape=jax.ShapeDtypeStruct((N, Cout), jnp.float32),
        grid_spec=pltpu.PrefetchScalarGridSpec(
            num_scalar_prefetch=0,
            grid=grid,
            in_specs=[
                pl.BlockSpec((tm, Cin), lambda i: (i, 0)),    # x row tile (f32)
                pl.BlockSpec((Cin, Cout), lambda i: (0, 0)),  # folded weight (resident, bf16)
                pl.BlockSpec((1, Cout), lambda i: (0, 0)),    # bias (resident, f32)
            ],
            out_specs=pl.BlockSpec((tm, Cout), lambda i: (i, 0)),
        ),
        compiler_params=pltpu.CompilerParams(
            dimension_semantics=("parallel",),
            vmem_limit_bytes=vmem_limit),
    )(x2, w_eff, bias)

    return out.reshape(B, H, W, Cout)


def init_params(key, in_features, out_features, rank, n_tasks, alpha_lora=1.0):
    """Deterministic synthetic parameters (linear weights stored transposed as (in, out))."""
    ks = jax.random.split(key, 4)
    s = 0.05
    return {
        # self.U is an externally supplied projection; modelled as a dense linear
        # with bias (pass zeros for bU if U has no bias).
        "wU": s * jax.random.normal(ks[0], (in_features, out_features), jnp.float32),
        "bU": s * jax.random.normal(ks[1], (out_features,), jnp.float32),
        # lora_A[t].weight is (rank, in) in torch; stored transposed (in, rank).
        "loraA": s * jax.random.normal(ks[2], (n_tasks, in_features, rank), jnp.float32),
        # lora_B[t].weight is (out, rank); stored transposed (rank, out).
        # NOTE: init_param() zeroes lora_B in the original; randomized here so the
        # LoRA path is actually exercised by the numeric check.
        "loraB": s * jax.random.normal(ks[3], (n_tasks, rank, out_features), jnp.float32),
        # self.alpha_lora (constructor constant)
        "alpha": float(alpha_lora),
    }


def reference_forward(x, params, task):
    """Pure-JAX reference mirroring the kernel's math path (LoRA folded, bf16 operands,
    f32 accumulation). Exact-arithmetic-equivalent to the PyTorch module; the bf16
    cast is an intentional precision trade-off shared by kernel and reference."""
    B, H, W, Cin = x.shape
    hi = jax.lax.Precision.HIGHEST
    A = params["loraA"][task].astype(jnp.float32)
    Bm = params["loraB"][task].astype(jnp.float32)
    w_eff = params["wU"] + params["alpha"] * jnp.dot(A, Bm, precision=hi)
    w_eff = w_eff.astype(jnp.bfloat16).astype(jnp.float32)
    xf = x.reshape(-1, Cin).astype(jnp.bfloat16).astype(jnp.float32)
    out = jnp.dot(xf, w_eff, precision=hi) + params["bU"][None, :]
    return out.reshape(B, H, W, -1)


if __name__ == "__main__":
    key = jax.random.PRNGKey(0)
    kx, kp = jax.random.split(key)

    batch, h, w = 2, 16, 16
    in_features, out_features = 64, 80      # out_features deliberately NOT a multiple of 128
    rank, n_tasks, task = 10, 3, 1

    x = jax.random.normal(kx, (batch, h, w, in_features), jnp.float32)
    params = init_params(kp, in_features, out_features, rank, n_tasks, alpha_lora=1.0)

    # Weight prep hoisted out of the forward path (once per task).
    fused = prepare_weights(params, task)
    fused = jax.tree_util.tree_map(jax.block_until_ready, fused)

    out = channel_projection_onelora(x, fused, tm=512)
    out = jax.block_until_ready(out)

    ref = reference_forward(x, params, task)
    assert out.shape == (batch, h, w, out_features)
    assert jnp.allclose(out, ref, atol=1e-2, rtol=1e-2), "mismatch vs reference"

    print("KERNEL_OK")
</pallas_src>

<mosaic_0001>
module attributes {stable_mosaic.version = 11 : i64} {
  func.func @_onelora_kernel(%arg0: i32, %arg1: memref<64x64xf32, #tpu.memory_space<vmem>>, %arg2: memref<64x80xbf16, #tpu.memory_space<vmem>>, %arg3: memref<1x80xf32, #tpu.memory_space<vmem>>, %arg4: memref<64x80xf32, #tpu.memory_space<vmem>>) attributes {dimension_semantics = [#tpu.dimension_semantics<parallel>], iteration_bounds = array<i64: 8>, scalar_prefetch = 0 : i64, scratch_operands = 0 : i64, tpu.core_type = #tpu.core_type<tc>, window_params = [{transform_indices = @transform_0, window_bounds = array<i64: 64, 64>}, {pipeline_mode = #tpu.pipeline_mode<synchronous>, transform_indices = @transform_1, window_bounds = array<i64: 64, 80>}, {pipeline_mode = #tpu.pipeline_mode<synchronous>, transform_indices = @transform_2, window_bounds = array<i64: 1, 80>}, {transform_indices = @transform_3, window_bounds = array<i64: 64, 80>}]} {
    %c0 = arith.constant 0 : index
    %c0_0 = arith.constant 0 : index
    %0 = vector.load %arg1[%c0, %c0_0] : memref<64x64xf32, #tpu.memory_space<vmem>>, vector<64x64xf32>
    %1 = arith.truncf %0 : vector<64x64xf32> to vector<64x64xbf16>
    %c0_1 = arith.constant 0 : index
    %c0_2 = arith.constant 0 : index
    %2 = vector.load %arg2[%c0_1, %c0_2] : memref<64x80xbf16, #tpu.memory_space<vmem>>, vector<64x80xbf16>
    %cst = arith.constant dense<0.000000e+00> : vector<64x80xf32>
    %3 = tpu.matmul %1, %2, %cst {dimension_numbers = #tpu.dot_dimension_numbers<[1], [0], [0], [1], [0, 0, 1, 1], [], []>} : vector<64x64xbf16>, vector<64x80xbf16>, vector<64x80xf32> -> vector<64x80xf32>
    %c0_3 = arith.constant 0 : index
    %c0_4 = arith.constant 0 : index
    %4 = vector.load %arg3[%c0_3, %c0_4] : memref<1x80xf32, #tpu.memory_space<vmem>>, vector<1x80xf32>
    %5 = vector.broadcast %4 : vector<1x80xf32> to vector<64x80xf32>
    %6 = arith.addf %3, %5 : vector<64x80xf32>
    %c0_5 = arith.constant 0 : index
    %c0_6 = arith.constant 0 : index
    %7 = vector.load %arg4[%c0_5, %c0_6] : memref<64x80xf32, #tpu.memory_space<vmem>>, vector<64x80xf32>
    tpu.vector_store %arg4[%c0_5, %c0_6], %6 {strides = array<i32>} : memref<64x80xf32, #tpu.memory_space<vmem>>, vector<64x80xf32>,
    return
  }
  func.func @transform_0(%arg0: i32) -> (i32, i32) {
    %c0_i32 = arith.constant 0 : i32
    %c0_i32_0 = arith.constant 0 : i32
    return %arg0, %c0_i32 : i32, i32
  }
  func.func @transform_1(%arg0: i32) -> (i32, i32) {
    %c0_i32 = arith.constant 0 : i32
    %c0_i32_0 = arith.constant 0 : i32
    %c0_i32_1 = arith.constant 0 : i32
    return %c0_i32, %c0_i32_0 : i32, i32
  }
  func.func @transform_2(%arg0: i32) -> (i32, i32) {
    %c0_i32 = arith.constant 0 : i32
    %c0_i32_0 = arith.constant 0 : i32
    %c0_i32_1 = arith.constant 0 : i32
    return %c0_i32, %c0_i32_0 : i32, i32
  }
  func.func @transform_3(%arg0: i32) -> (i32, i32) {
    %c0_i32 = arith.constant 0 : i32
    %c0_i32_0 = arith.constant 0 : i32
    return %arg0, %c0_i32 : i32, i32
  }
}

</mosaic_0001>

<bundles_post_ra>
// kernel: tpu_custom_call.1
= control target key start
LH: loop header
LB: loop body
LE: loop exit
PB: predicated region body
PF: predicated region fallthrough
CT: control target
= control target key end

     0   :  { %s461_s12 = smov 0   ;;  %s512_s0 = inlined_call_operand.vmem [shape: f32[512,64], index: 0, kind: input, shape index: {}]   ;;  %s513_s1 = inlined_call_operand.vmem [shape: bf16[64,80], index: 1, kind: input, shape index: {}]   ;;  %s514_s2 = inlined_call_operand.vmem [shape: f32[1,80], index: 2, kind: input, shape index: {}]   ;;  %s515_s3 = inlined_call_operand.vmem [shape: f32[512,80], index: 3, kind: output, shape index: {}]  }
   0x1 LB: > { %s369_s13 = sadd.s32 4294967295, %s439_s12   ;;  %p373_p0 = scmp.ge.s32.totalorder %s439_s12, 1  ;;  %s439_s12 = sphi %s461_s12, %s13_s12  }
   0x2   : > { %p138_p1 = scmp.lt.s32.totalorder %s439_s12, 9 }
   0x4   : > { %p139_p2 = pnand %p373_p0, %p138_p1 }
   0x5   : > { %s374_s16 = sshll.u32 (!%p139_p2), %s369_s13, 3 }
   0x6   : > { %142 = sbr.rel (%p139_p2) target bundleno = 230 (0xe6), region = 32  ;;  %p163_p3 = scmp.lt.s32.totalorder (!%p139_p2), %s374_s16, 63 }
   0xb   : > { %v429_v0 = vld [vmem:[%s513_s1 + $0x18] sm:$0xff]   ;;  %v430_v1 = vld [vmem:[%s513_s1 + $0x10] sm:$0xff]   ;;  %s517_s16 = smov (!%p163_p3, %s374_s16), 63  ;;  %v431_v2 = vld [vmem:[%s513_s1 + $0x8] sm:$0xff]   ;;  %vm226_vm0 = vcmask 523264   ;;  %vm304_vm1 = vcmask 654336  }
   0xc   : > { %397 = vmatprep.subr.bf16.mxu0 %v429_v0  ;;  %413 = vmatprep.subr.bf16.mxu1 %v429_v0  ;;  %s375_s21 = sshll.u32 %s517_s16, 3  ;;  %v432_v6 = vld [vmem:[%s513_s1] sm:$0xff]  }
   0xd   : > { %398 = vmatpush3.bf16.msra.mxu0 %v429_v0  ;;  %417 = vmatpush3.bf16.msra.mxu1 %v429_v0  ;;  %s166_s24 = scalar_lea.vmem %s512_s0, %s375_s21  ;;  %v378_v16 = vld [vmem:[%s514_s2] ss:$0 sm:$0xff]  ;;  %s172_s4 = scalar_lea.vmem %s515_s3, %s375_s21 }
   0xe   : > { %399 = vmatprep.subr.bf16.mxu0 %v430_v1  ;;  %414 = vmatprep.subr.bf16.mxu1 %v430_v1  ;;  %v175_v3 = vld [vmem:[%s166_s24] sm:$0xff]  ;;  %v176_v4 = vld [vmem:[%s166_s24 + $0x8] sm:$0xff]  ;;  %v177_v10 = vld [vmem:[%s166_s24 + $0x10] sm:$0xff] }
   0xf   : > { %v179_v5 = vld [vmem:[%s166_s24 + $0x20] sm:$0xff]  ;;  %v183_v7 = vpack.c.bf16 %v176_v4, %v175_v3  ;;  %v180_v8 = vld [vmem:[%s166_s24 + $0x28] sm:$0xff]  ;;  %v178_v11 = vld [vmem:[%s166_s24 + $0x18] sm:$0xff] }
  0x10   : > { %v185_v9 = vpack.c.bf16 %v180_v8, %v179_v5  ;;  %v181_v12 = vld [vmem:[%s166_s24 + $0x30] sm:$0xff]  ;;  %v182_v13 = vld [vmem:[%s166_s24 + $0x38] sm:$0xff]  ;;  %v184_v14 = vpack.c.bf16 %v178_v11, %v177_v10 }
  0x11   : > { %400 = vmatpush3.bf16.msra.mxu0 %v430_v1  ;;  %418 = vmatpush3.bf16.msra.mxu1 %v430_v1  ;;  %v186_v15 = vpack.c.bf16 %v182_v13, %v181_v12 }
  0x12   : > { %401 = vmatprep.subr.bf16.mxu0 %v431_v2  ;;  %415 = vmatprep.subr.bf16.mxu1 %v431_v2 }
  0x13   : > { %405 = vmatprep.mubr.msk.bf16.mxu0 %vm226_vm0, %v183_v7  ;;  %409 = vmatprep.mubr.msk.bf16.mxu1 %vm226_vm0, %v185_v9 }
  0x15   : > { %402 = vmatpush3.bf16.msra.mxu0 %v431_v2  ;;  %419 = vmatpush3.bf16.msra.mxu1 %v431_v2 }
  0x16   : > { %403 = vmatprep.subr.bf16.mxu0 %v432_v6  ;;  %416 = vmatprep.subr.bf16.mxu1 %v432_v6 }
  0x19   : > { %404 = vmatpush3.bf16.msra.mxu0 %v432_v6  ;;  %420 = vmatpush3.bf16.msra.mxu1 %v432_v6 }
  0x1c   : > { %406 = vmatmul.mubr.msk.bf16.vlgmr.msra.gmra.mxu0 %vm226_vm0, %v184_v14  ;;  %410 = vmatmul.mubr.msk.bf16.vlgmr.msra.gmra.mxu1 %vm226_vm0, %v186_v15 }
  0xdc   : > { %v407_v17 = vpop.f32.mrf.mxu0  ;;  %v411_v18 = vpop.f32.mrf.mxu1 }
  0xdd   : > { %v282_v19 = vadd.f32 %v407_v17, %v378_v16  ;;  %v298_v20 = vadd.f32 %v411_v18, %v378_v16 }
  0xde   : > { %v273_v21 = vpop.f32.mrf.mxu0  ;;  %v289_v22 = vpop.f32.mrf.mxu1 }
  0xdf   : > { %307 = vst.msk [vmem:[%s172_s4 + $0x10] sm:$0xff] %vm304_vm1, %v282_v19  ;;  %311 = vst.msk [vmem:[%s172_s4 + $0x30] sm:$0xff] %vm304_vm1, %v298_v20  ;;  %v274_v23 = vadd.f32 %v378_v16, %v273_v21  ;;  %v290_v24 = vadd.f32 %v378_v16, %v289_v22 }
  0xe0   : > { %v408_v25 = vpop.f32.mrf.mxu0  ;;  %v412_v26 = vpop.f32.mrf.mxu1 }
  0xe1   : > { %305 = vst.msk [vmem:[%s172_s4] sm:$0xff] %vm304_vm1, %v274_v23  ;;  %309 = vst.msk [vmem:[%s172_s4 + $0x20] sm:$0xff] %vm304_vm1, %v290_v24  ;;  %v285_v27 = vadd.f32 %v408_v25, %v378_v16  ;;  %v301_v28 = vadd.f32 %v412_v26, %v378_v16 }
  0xe2   : > { %v276_v29 = vpop.f32.mrf.mxu0  ;;  %v292_v30 = vpop.f32.mrf.mxu1 }
  0xe3   : > { %308 = vst.msk [vmem:[%s172_s4 + $0x18] sm:$0xff] %vm304_vm1, %v285_v27  ;;  %312 = vst.msk [vmem:[%s172_s4 + $0x38] sm:$0xff] %vm304_vm1, %v301_v28  ;;  %v277_v31 = vadd.f32 %v378_v16, %v276_v29  ;;  %v293_v32 = vadd.f32 %v378_v16, %v292_v30 }
  0xe5   : > { %306 = vst.msk [vmem:[%s172_s4 + $0x8] sm:$0xff] %vm304_vm1, %v277_v31  ;;  %310 = vst.msk [vmem:[%s172_s4 + $0x28] sm:$0xff] %vm304_vm1, %v293_v32 }
  0xe6 PF: > { %s13_s12 = sadd.s32 1, %s439_s12  }
  0xe7   : > { %p10_p4 = scmp.ge.s32.totalorder %s13_s12, 10  }
  0xe9   :  { %12 = sbr.rel (!%p10_p4) target bundleno = 1 (0x1), region = 62 }

</bundles_post_ra>
